<compile_context>
chip_gen: v7x
topology: tpu7x:2x2x1
jax: 0.10.0
libtpu: 0.0.40
codegen_flags: <defaults>
</compile_context>

<pallas_src>
import functools

import jax
import jax.numpy as jnp
from jax import lax
from jax.experimental import pallas as pl
from jax.experimental.pallas import tpu as pltpu


def _transition_kernel(x_ref, scale_ref, bias_ref, w_ref, o_ref, z_ref, *, W, tHo):
    # x_ref:     (1, Cin, tH*W)    channel-major input tile (tH = 2*tHo rows), f32
    # scale_ref: (Cin, 1)          folded BN scale, f32
    # bias_ref:  (Cin, 1)          folded BN bias, f32
    # w_ref:     (Cin, Cout)       1x1 conv weight, bf16
    # o_ref:     (1, tHo*Wo, Cout) output tile, spatial-major, f32
    # z_ref:     (tH*W, Cout)      VMEM scratch: conv output before pooling, f32
    Wo = W // 2
    tH = 2 * tHo

    x = x_ref[0]                                                   # (Cin, tH*W)
    # BN (folded) + ReLU in f32 on the VPU; (Cin, 1) broadcasts along lanes.
    y = jnp.maximum(x * scale_ref[...] + bias_ref[...], 0.0)

    # 1x1 conv: contract the channel dim.  bf16 operands, f32 accumulation.
    # lhs is channel-major, so the "TN" matmul absorbs the NCHW->NHWC transpose.
    z = lax.dot_general(
        y.astype(jnp.bfloat16), w_ref[...],
        dimension_numbers=(((0,), (0,)), ((), ())),
        preferred_element_type=jnp.float32)                        # (tH*W, Cout)
    z_ref[...] = z

    # --- 2x2 / stride-2 average pool on the VPU ---------------------------------
    # W direction: flat rows s = h*W + w; pair (h, 2ow) with (h, 2ow+1) via
    # sublane stride-2 reads of the scratch.  Result row index = h*Wo + ow.
    half = tH * Wo
    c = (z_ref[pl.ds(0, half, stride=2), :] +
         z_ref[pl.ds(1, half, stride=2), :])                       # (tH*Wo, Cout)

    # H direction: pair the Wo-row blocks for h = 2k and h = 2k+1 (static slices;
    # tHo is kept small so this unrolls to a handful of adds).
    parts = []
    for k in range(tHo):
        top = c[(2 * k) * Wo:(2 * k + 1) * Wo, :]
        bot = c[(2 * k + 1) * Wo:(2 * k + 2) * Wo, :]
        parts.append(top + bot)
    pooled = parts[0] if tHo == 1 else jnp.concatenate(parts, axis=0)
    o_ref[0] = (pooled * 0.25).astype(o_ref.dtype)


def _pick_tile_rows(Ho, W, Cin):
    """Output rows per tile: divisor of Ho, (8,128)-friendly blocks, small VMEM."""
    Wo = W // 2
    budget = 2 * 1024 * 1024                      # ~2 MiB per input tile
    best = Ho                                     # fallback: whole image per step
    for cand in range(1, min(Ho, 4) + 1):
        if Ho % cand:
            continue
        if (2 * cand * W) % 128 or (cand * Wo) % 8:
            continue                              # keep minor block dims aligned
        if Cin * 2 * cand * W * 4 > budget:
            continue
        best = cand
    return best


def transition_blk(x_nchw, gamma, beta, running_mean, running_var, conv_w,
                   eps=1e-5):
    """Forward pass of TransitionBLK. x_nchw: (N, Cin, H, W) float32 -> NCHW out."""
    N, Cin, H, W = x_nchw.shape
    Cout = conv_w.shape[0]
    assert H % 2 == 0 and W % 2 == 0
    Ho, Wo = H // 2, W // 2

    # Fold BN (inference mode / running stats) into per-channel scale & bias.
    scale = (gamma / jnp.sqrt(running_var + eps)).astype(jnp.float32)
    bias = (beta - running_mean * scale).astype(jnp.float32)

    # NCHW -> (N, Cin, H*W): pure reshape, no HBM transpose pass.
    xf = x_nchw.reshape(N, Cin, H * W).astype(jnp.float32)

    # 1x1 conv weight (Cout, Cin, 1, 1) -> (Cin, Cout), bf16 for the MXU.
    w = conv_w.reshape(Cout, Cin).T.astype(jnp.bfloat16)

    tHo = _pick_tile_rows(Ho, W, Cin)
    tH = 2 * tHo
    nT = Ho // tHo

    kernel = functools.partial(_transition_kernel, W=W, tHo=tHo)

    out = pl.pallas_call(
        kernel,
        out_shape=jax.ShapeDtypeStruct((N, Ho * Wo, Cout), jnp.float32),
        grid_spec=pltpu.PrefetchScalarGridSpec(
            num_scalar_prefetch=0,
            grid=(N, nT),
            in_specs=[
                # streamed input tile: tH full image rows, channel-major
                pl.BlockSpec((1, Cin, tH * W), lambda n, t: (n, 0, t)),
                # constants: fetched once (block index never changes)
                pl.BlockSpec((Cin, 1), lambda n, t: (0, 0)),
                pl.BlockSpec((Cin, 1), lambda n, t: (0, 0)),
                pl.BlockSpec((Cin, Cout), lambda n, t: (0, 0)),
            ],
            out_specs=pl.BlockSpec((1, tHo * Wo, Cout), lambda n, t: (n, t, 0)),
            scratch_shapes=[pltpu.VMEM((tH * W, Cout), jnp.float32)],
        ),
        compiler_params=pltpu.CompilerParams(
            dimension_semantics=("parallel", "parallel")),
    )(xf, scale.reshape(Cin, 1), bias.reshape(Cin, 1), w)

    # (N, Ho*Wo, Cout) -> NCHW (N, Cout, Ho, Wo).  The output is 8x smaller than
    # the input, so this is the only remaining layout pass over HBM.
    return jnp.transpose(out.reshape(N, Ho, Wo, Cout), (0, 3, 1, 2))


def reference(x_nchw, gamma, beta, running_mean, running_var, conv_w, eps=1e-5):
    """Pure-JAX f32 reference replicating the PyTorch forward (eval-mode BN)."""
    scale = gamma / jnp.sqrt(running_var + eps)
    bias = beta - running_mean * scale
    y = jnp.maximum(
        x_nchw * scale[None, :, None, None] + bias[None, :, None, None], 0.0)
    w2 = conv_w.reshape(conv_w.shape[0], conv_w.shape[1])           # (Cout, Cin)
    z = jnp.einsum('nchw,oc->nohw', y, w2)
    N, Co, H, W = z.shape
    return z.reshape(N, Co, H // 2, 2, W // 2, 2).mean(axis=(3, 5))


if __name__ == "__main__":
    key = jax.random.PRNGKey(0)
    k_x, k_w, k_g, k_b, k_m, k_v = jax.random.split(key, 6)

    N, Cin, H, W = 2, 4, 16, 16
    Cout = 2   # transition typically halves the channels

    x = jax.random.normal(k_x, (N, Cin, H, W), dtype=jnp.float32)
    conv_w = jax.random.normal(k_w, (Cout, Cin, 1, 1), dtype=jnp.float32) * 0.1
    gamma = 1.0 + 0.1 * jax.random.normal(k_g, (Cin,), dtype=jnp.float32)
    beta = 0.1 * jax.random.normal(k_b, (Cin,), dtype=jnp.float32)
    running_mean = 0.1 * jax.random.normal(k_m, (Cin,), dtype=jnp.float32)
    running_var = jnp.abs(jax.random.normal(k_v, (Cin,), dtype=jnp.float32)) + 0.5

    out = transition_blk(x, gamma, beta, running_mean, running_var, conv_w)
    out = jax.block_until_ready(out)

    ref = reference(x, gamma, beta, running_mean, running_var, conv_w)
    assert out.shape == (N, Cout, H // 2, W // 2), out.shape
    # bf16 matmul inputs (f32 accumulation) -> loosen the tolerance accordingly.
    assert jnp.allclose(out, ref, atol=2e-2, rtol=2e-2), \
        float(jnp.max(jnp.abs(out - ref)))

    print("KERNEL_OK")
</pallas_src>

<mosaic_0001>
module attributes {stable_mosaic.version = 11 : i64} {
  func.func @_transition_kernel(%arg0: i32, %arg1: i32, %arg2: memref<1x4x128xf32, #tpu.memory_space<vmem>>, %arg3: memref<4x1xf32, #tpu.memory_space<vmem>>, %arg4: memref<4x1xf32, #tpu.memory_space<vmem>>, %arg5: memref<4x2xbf16, #tpu.memory_space<vmem>>, %arg6: memref<1x32x2xf32, #tpu.memory_space<vmem>>, %arg7: memref<128x2xf32, #tpu.memory_space<vmem>>) attributes {dimension_semantics = [#tpu.dimension_semantics<parallel>, #tpu.dimension_semantics<parallel>], iteration_bounds = array<i64: 2, 2>, scalar_prefetch = 0 : i64, scratch_operands = 1 : i64, tpu.core_type = #tpu.core_type<tc>, window_params = [{transform_indices = @transform_0, window_bounds = array<i64: 1, 4, 128>}, {pipeline_mode = #tpu.pipeline_mode<synchronous>, transform_indices = @transform_1, window_bounds = array<i64: 4, 1>}, {pipeline_mode = #tpu.pipeline_mode<synchronous>, transform_indices = @transform_2, window_bounds = array<i64: 4, 1>}, {pipeline_mode = #tpu.pipeline_mode<synchronous>, transform_indices = @transform_3, window_bounds = array<i64: 4, 2>}, {transform_indices = @transform_4, window_bounds = array<i64: 1, 32, 2>}]} {
    %c0 = arith.constant 0 : index
    %c0_0 = arith.constant 0 : index
    %c0_1 = arith.constant 0 : index
    %0 = vector.load %arg2[%c0, %c0_0, %c0_1] : memref<1x4x128xf32, #tpu.memory_space<vmem>>, vector<1x4x128xf32>
    %1 = vector.shape_cast %0 : vector<1x4x128xf32> to vector<4x128xf32>
    %c0_2 = arith.constant 0 : index
    %c0_3 = arith.constant 0 : index
    %2 = vector.load %arg3[%c0_2, %c0_3] : memref<4x1xf32, #tpu.memory_space<vmem>>, vector<4x1xf32>
    %3 = vector.broadcast %2 : vector<4x1xf32> to vector<4x128xf32>
    %4 = arith.mulf %1, %3 : vector<4x128xf32>
    %c0_4 = arith.constant 0 : index
    %c0_5 = arith.constant 0 : index
    %5 = vector.load %arg4[%c0_4, %c0_5] : memref<4x1xf32, #tpu.memory_space<vmem>>, vector<4x1xf32>
    %6 = vector.broadcast %5 : vector<4x1xf32> to vector<4x128xf32>
    %7 = arith.addf %4, %6 : vector<4x128xf32>
    %cst = arith.constant 0.000000e+00 : f32
    %8 = vector.broadcast %cst : f32 to vector<4x128xf32>
    %9 = arith.maximumf %7, %8 : vector<4x128xf32>
    %10 = arith.truncf %9 : vector<4x128xf32> to vector<4x128xbf16>
    %c0_6 = arith.constant 0 : index
    %c0_7 = arith.constant 0 : index
    %11 = vector.load %arg5[%c0_6, %c0_7] : memref<4x2xbf16, #tpu.memory_space<vmem>>, vector<4x2xbf16>
    %cst_8 = arith.constant dense<0.000000e+00> : vector<128x2xf32>
    %12 = tpu.matmul %10, %11, %cst_8 {dimension_numbers = #tpu.dot_dimension_numbers<[0], [0], [1], [1], [0, 1, 1, 1], [], []>} : vector<4x128xbf16>, vector<4x2xbf16>, vector<128x2xf32> -> vector<128x2xf32>
    %c0_9 = arith.constant 0 : index
    %c0_10 = arith.constant 0 : index
    %13 = vector.load %arg7[%c0_9, %c0_10] : memref<128x2xf32, #tpu.memory_space<vmem>>, vector<128x2xf32>
    tpu.vector_store %arg7[%c0_9, %c0_10], %12 {strides = array<i32>} : memref<128x2xf32, #tpu.memory_space<vmem>>, vector<128x2xf32>,
    %c0_11 = arith.constant 0 : index
    %c0_12 = arith.constant 0 : index
    %14 = tpu.strided_load %arg7[%c0_11, %c0_12] {strides = array<i32: 2, 1>} : memref<128x2xf32, #tpu.memory_space<vmem>>, vector<64x2xf32>
    %c1 = arith.constant 1 : index
    %c0_13 = arith.constant 0 : index
    %15 = tpu.strided_load %arg7[%c1, %c0_13] {strides = array<i32: 2, 1>} : memref<128x2xf32, #tpu.memory_space<vmem>>, vector<64x2xf32>
    %16 = arith.addf %14, %15 : vector<64x2xf32>
    %17 = vector.extract_strided_slice %16 {offsets = [0, 0], sizes = [8, 2], strides = [1, 1]} : vector<64x2xf32> to vector<8x2xf32>
    %18 = vector.extract_strided_slice %16 {offsets = [8, 0], sizes = [8, 2], strides = [1, 1]} : vector<64x2xf32> to vector<8x2xf32>
    %19 = arith.addf %17, %18 : vector<8x2xf32>
    %20 = vector.extract_strided_slice %16 {offsets = [16, 0], sizes = [8, 2], strides = [1, 1]} : vector<64x2xf32> to vector<8x2xf32>
    %21 = vector.extract_strided_slice %16 {offsets = [24, 0], sizes = [8, 2], strides = [1, 1]} : vector<64x2xf32> to vector<8x2xf32>
    %22 = arith.addf %20, %21 : vector<8x2xf32>
    %23 = vector.extract_strided_slice %16 {offsets = [32, 0], sizes = [8, 2], strides = [1, 1]} : vector<64x2xf32> to vector<8x2xf32>
    %24 = vector.extract_strided_slice %16 {offsets = [40, 0], sizes = [8, 2], strides = [1, 1]} : vector<64x2xf32> to vector<8x2xf32>
    %25 = arith.addf %23, %24 : vector<8x2xf32>
    %26 = vector.extract_strided_slice %16 {offsets = [48, 0], sizes = [8, 2], strides = [1, 1]} : vector<64x2xf32> to vector<8x2xf32>
    %27 = vector.extract_strided_slice %16 {offsets = [56, 0], sizes = [8, 2], strides = [1, 1]} : vector<64x2xf32> to vector<8x2xf32>
    %28 = arith.addf %26, %27 : vector<8x2xf32>
    %29 = tpu.concatenate %19, %22, %25, %28 in 0 : vector<8x2xf32>, vector<8x2xf32>, vector<8x2xf32>, vector<8x2xf32> -> vector<32x2xf32>
    %cst_14 = arith.constant 2.500000e-01 : f32
    %30 = vector.broadcast %cst_14 : f32 to vector<32x2xf32>
    %31 = arith.mulf %29, %30 : vector<32x2xf32>
    %c0_15 = arith.constant 0 : index
    %c0_16 = arith.constant 0 : index
    %c0_17 = arith.constant 0 : index
    %32 = vector.load %arg6[%c0_15, %c0_16, %c0_17] : memref<1x32x2xf32, #tpu.memory_space<vmem>>, vector<1x32x2xf32>
    %33 = vector.shape_cast %32 : vector<1x32x2xf32> to vector<32x2xf32>
    %34 = vector.shape_cast %31 : vector<32x2xf32> to vector<1x32x2xf32>
    tpu.vector_store %arg6[%c0_15, %c0_16, %c0_17], %34 {strides = array<i32>} : memref<1x32x2xf32, #tpu.memory_space<vmem>>, vector<1x32x2xf32>,
    return
  }
  func.func @transform_0(%arg0: i32, %arg1: i32) -> (i32, i32, i32) {
    %c0_i32 = arith.constant 0 : i32
    %c0_i32_0 = arith.constant 0 : i32
    return %arg0, %c0_i32, %arg1 : i32, i32, i32
  }
  func.func @transform_1(%arg0: i32, %arg1: i32) -> (i32, i32) {
    %c0_i32 = arith.constant 0 : i32
    %c0_i32_0 = arith.constant 0 : i32
    %c0_i32_1 = arith.constant 0 : i32
    return %c0_i32, %c0_i32_0 : i32, i32
  }
  func.func @transform_2(%arg0: i32, %arg1: i32) -> (i32, i32) {
    %c0_i32 = arith.constant 0 : i32
    %c0_i32_0 = arith.constant 0 : i32
    %c0_i32_1 = arith.constant 0 : i32
    return %c0_i32, %c0_i32_0 : i32, i32
  }
  func.func @transform_3(%arg0: i32, %arg1: i32) -> (i32, i32) {
    %c0_i32 = arith.constant 0 : i32
    %c0_i32_0 = arith.constant 0 : i32
    %c0_i32_1 = arith.constant 0 : i32
    return %c0_i32, %c0_i32_0 : i32, i32
  }
  func.func @transform_4(%arg0: i32, %arg1: i32) -> (i32, i32, i32) {
    %c0_i32 = arith.constant 0 : i32
    %c0_i32_0 = arith.constant 0 : i32
    return %arg0, %arg1, %c0_i32 : i32, i32, i32
  }
}

</mosaic_0001>

<bundles_post_ra>
// kernel: tpu_custom_call.1
= control target key start
LH: loop header
LB: loop body
LE: loop exit
PB: predicated region body
PF: predicated region fallthrough
CT: control target
= control target key end

     0   :  { %9 = vsyncpa [#allocation4], 0  ;;  %s1013_s0 = inlined_call_operand.hbm [shape: f32[2,4,256], index: 0, kind: input, shape index: {}]   ;;  %s1014_s1 = inlined_call_operand.vmem [shape: f32[4,1], index: 1, kind: input, shape index: {}]   ;;  %s1015_s2 = inlined_call_operand.vmem [shape: f32[4,1], index: 2, kind: input, shape index: {}]   ;;  %s1016_s3 = inlined_call_operand.vmem [shape: bf16[4,2], index: 3, kind: input, shape index: {}]   ;;  %s1017_s4 = inlined_call_operand.vmem [shape: f32[2,64,2], index: 4, kind: output, shape index: {}]  }
   0x1   :  { %11 = vsyncpa [#allocation4 + $0x1], 0  ;;  %s819_s15 = smov 0   ;;  %s821_s16 = smov 0  }
   0x2   :  { %s823_s17 = smov 0   ;;  %s825_s18 = smov 0  }
   0x3   :  { %s827_s19 = smov 0   ;;  %s829_s20 = smov 0  }
   0x4   :  { %s831_s21 = smov 0   ;;  %s833_s22 = smov 0  }
   0x5 LB: > { %s568_s23 = sadd.s32 4294967295, %s790_s22   ;;  %s26_s24 = sadd.s32 1, %s782_s20  ;;  %s790_s22 = sphi %s833_s22, %s17_s22   ;;  %s786_s21 = sphi %s831_s21, %s1029_s21   ;;  %s782_s20 = sphi %s829_s20, %s1028_s20   ;;  %s778_s19 = sphi %s827_s19, %s1027_s19   ;;  %s774_s18 = sphi %s825_s18, %s1026_s18   ;;  %s770_s17 = sphi %s823_s17, %s1025_s17   ;;  %s766_s16 = sphi %s821_s16, %s1024_s16   ;;  %s762_s15 = sphi %s819_s15, %s1023_s15  }
   0x6   : > { %p27_p0 = scmp.ge.s32.totalorder %s26_s24, 2  ;;  %s29_s25 = sadd.s32 1, %s786_s21 }
   0x7   : > { %s38_s26 = sadd.s32 1, %s770_s17  ;;  %p45_p1 = scmp.ne.s32.totalorder %s770_s17, %s766_s16 }
   0x8   : > { %s1031_s24 = smov (%p27_p0, %s26_s24), 0  ;;  %s1033_s25 = smov (!%p27_p0, %s29_s25), %s786_s21 }
   0x9   : > { %s34_s27 = ssub.s32 %s782_s20, %s1031_s24  ;;  %p46_p2 = scmp.eq.s32.totalorder %s790_s22, 0 }
   0xa   : > { %p31_p3 = scmp.ge.s32.totalorder %s1033_s25, 2  ;;  %p51_p4 = scmp.ne.s32.totalorder %s766_s16, %s762_s15 }
   0xb   : > { %p870_p5 = por %p46_p2, %p45_p1  ;;  %p52_p6 = scmp.eq.s32.totalorder %s568_s23, 0 }
   0xc   : > { %s1035_s25 = smov (%p31_p3, %s1033_s25), 0  ;;  %p627_p8 = scmp.lt.s32.totalorder %s790_s22, 4 }
   0xd   : > { %p876_p7 = por %p52_p6, %p51_p4  ;;  %s33_s30 = ssub.s32 %s786_s21, %s1035_s25 }
   0xe   : > { %s35_s5 = sor.u32 %s34_s27, %s33_s30  ;;  %s175_s6 = sand.u32 1, %s770_s17  }
   0xf   : > { %p36_p9 = scmp.eq.s32.totalorder %s35_s5, 0  ;;  %s572_s7 = sshll.u32 %s175_s6, 2 }
  0x10   : > { %s573_s8 = sshll.u32 %s786_s21, 1  ;;  %s179_s12 = scalar_lea.vmem [#allocation3], %s572_s7 }
  0x11   : > { %s886_s9 = scalar_select %p36_p9, %s770_s17, %s38_s26  }
  0x12   : > { %s184_s10 = sadd.s32 %s782_s20, %s573_s8  ;;  %s188_s13 = sshll.u32 %s179_s12, 4  ;;  %s894_s13 = int_to_ptr.vmem [resolvable:$true] %s188_s13 }
  0x13   : > { %s574_s11 = sshll.u32 %s184_s10, 6  ;;  %p900_p10 = pnand %p627_p8, %p870_p5 }
  0x14   : > { %s892_s23 = scalar_lea.hbm %s1013_s0, %s574_s11  ;;  %s176_s27 = scalar_lea.sflag [#allocation4], %s175_s6 }
  0x15   : > { %s694_s30 = scalar_lea.hbm %s892_s23, 64  ;;  %p696_p0 = pneg %p900_p10 }
  0x16   : > { %p695_p13 = scmp.ne.s32.totalorder %s892_s23, %s694_s30  ;;  %s699_s7 = scalar_lea.hbm %s1013_s0, 256 }
  0x17   : > { %p700_p3 = scmp.lt.u32.totalorder %s892_s23, %s1013_s0  ;;  %p701_p4 = scmp.lt.u32.totalorder %s699_s7, %s694_s30 }
  0x18   : > { %p697_p1 = pnand %p696_p0, %p695_p13  ;;  %p703_p6 = scmp.lt.u32.totalorder %s694_s30, %s892_s23 }
  0x19   : > { %p702_p5 = por %p701_p4, %p700_p3 }
  0x1a   : > { %p698_p2 = pneg %p697_p1 }
  0x1b   : > { %p704_p8 = por %p703_p6, %p702_p5 }
  0x1d   : > { %p705_p9 = pnand %p704_p8, %p698_p2 }
  0x1f   : > { %708 = shalt.err (!%p705_p9)
}
  0x20   : > { %s709_s6 = scalar_lea.vmem %s894_s13, 64  ;;  %s792_s11 = smov [#allocation3]  }
  0x21   : > { %p710_p13 = scmp.ne.s32.totalorder %s894_s13, %s709_s6  ;;  %s714_s12 = sshll.u32 %s792_s11, 4  ;;  %s715_s12 = int_to_ptr.vmem [resolvable:$false] %s714_s12 }
  0x22   : > { %s716_s14 = scalar_lea.vmem %s715_s12, 128  ;;  %p717_p12 = scmp.lt.s32.totalorder %s894_s13, %s715_s12 }
  0x23   : > { %p712_p1 = pnand %p710_p13, %p696_p0  ;;  %p718_p3 = scmp.lt.s32.totalorder %s716_s14, %s709_s6 }
  0x25   : > { %p713_p11 = pneg %p712_p1  ;;  %p719_p4 = por %p718_p3, %p717_p12 }
  0x27   : > { %p720_p5 = pnand %p719_p4, %p713_p11 }
  0x29   : > { %723 = shalt.err (!%p720_p5)
}
  0x2a   : > { %626 = dma.hbm_to_vmem [thread:$0]  (!%p900_p10), %s892_s23, 64, %s894_s13, %s176_s27  }
  0x2b   : > { %p1021_p2 = scmp.lt.s32.totalorder %s790_s22, 5  ;;  %p1022_p6 = scmp.ge.s32.totalorder %s790_s22, 1 }
  0x2d   : > { %p194_p0 = pnand %p1022_p6, %p1021_p2 }
  0x2e   : > { %s199_s15 = sand.u32 (!%p194_p0), 1, %s766_s16  }
  0x2f   : > { %197 = sbr.rel (%p194_p0) target bundleno = 556 (0x22c), region = 36  ;;  %s576_s30 = sshll.u32 (!%p194_p0), %s199_s15, 2 }
  0x30   : > { %s200_s5 = scalar_lea.sflag (!%p194_p0), [#allocation4], %s199_s15  ;;  %s203_s28 = scalar_lea.vmem (!%p194_p0), [#allocation3], %s576_s30 }
  0x36   : > { %757 = dma.done.wait (%p876_p7), %s200_s5, 64  }
  0x37   : > { %759 = vsyncadd (%p876_p7), %s200_s5, 4294967232  ;;  %v793_v0 = vmov 0   ;;  %v244_v1 = vld [vmem:[%s1014_s1] sm:$0xf]  ;;  %vm302_vm0 = vcmask 1041408   ;;  %vm277_vm1 = vcmask 31744  }
  0x38   : > { %693 = vset.pattern.permute.xlu0 %v793_v0  ;;  %v251_v2 = vld [vmem:[%s1015_s2] sm:$0xf]  ;;  %vm403_vm2 = vcmask 15360   ;;  %s577_s29 = sshll.u32 %s774_s18, 2  ;;  %p233_p7 = scmp.lt.s32.totalorder %s778_s19, 1 }
  0x39   : > { %247 = vperm.xlu0 %693, %v244_v1   ;;  %v260_v3 = vld [vmem:[%s1016_s3] sm:$0x3]  ;;  %p235_p10 = scmp.lt.s32.totalorder %s577_s29, 7 }
  0x3a   : > { %619 = vmatprep.subr.msk.bf16.mxu0 %vm302_vm0, %v260_v3  ;;  %v304_v4 = vsel %vm302_vm0, %v260_v3, 0  ;;  %620 = vmatprep.subr.msk.bf16.mxu1 %vm302_vm0, %v260_v3  ;;  %v243_v6 = vld [vmem:[%s203_s28] sm:$0xf]  ;;  %s1037_s19 = smov (!%p233_p7, %s778_s19), 1 }
  0x3b   : > { %600 = vmatpush3.bf16.msra.mxu0 %v304_v4  ;;  %618 = vmatpush3.bf16.msra.mxu1 %v304_v4  ;;  %s1039_s29 = smov (!%p235_p10, %s577_s29), 7  ;;  %s578_s10 = sshll.u32 %s1037_s19, 3 }
  0x3c   : > { %s238_s6 = sadd.s32 %s578_s10, %s1039_s29 }
  0x3d   : > { %254 = vperm.xlu0 %693, %v251_v2   ;;  %s579_s18 = sshll.u32 %s238_s6, 3 }
  0x3e   : > { %s971_s12 = scalar_lea.vmem %s1017_s4, %s579_s18 }
  0xb8   : > { %v248_v5 = vpop.permute.xlu0 %247 }
  0xb9   : > { %v250_v7 = vmul.f32 %v248_v5, %v243_v6 }
  0xbc   : > { %v255_v8 = vpop.permute.xlu0 %254 }
  0xbd   : > { %v257_v9 = vadd.f32 %v255_v8, %v250_v7 }
  0xbf   : > { %v258_v10 = vmax.f32 %v257_v9, 0.0 }
  0xc1   : > { %v259_v11 = vpack.c.bf16 %v258_v10, %v258_v10 }
  0xc3   : > { %261 = vxpose.xlu1.c.b16.start.end [1/1] (short) %v259_v11, 128 }
 0x129   : > { %v269_v12 = vpop.trf.xlu1 }
 0x12a   : > { %601 = vmatprep.mubr.msk.bf16.mxu0 %vm277_vm1, %v269_v12 }
 0x12d   : > { %v270_v13 = vpop.trf.xlu1 }
 0x12e   : > { %602 = vmatmul.mubr.msk.bf16.vlgmr.msra.gmra.mrb[0].mxu0 %vm277_vm1, %v270_v13 }
 0x131   : > { %v271_v14 = vpop.trf.xlu1 }
 0x132   : > { %605 = vmatprep.mubr.msk.bf16.mxu0 %vm277_vm1, %v271_v14 }
 0x135   : > { %v272_v15 = vpop.trf.xlu1 }
 0x136   : > { %606 = vmatmul.mubr.msk.bf16.gmra.mrb[4].mxu0 %vm277_vm1, %v272_v15 }
 0x139   : > { %v273_v16 = vpop.trf.xlu1 }
 0x13a   : > { %609 = vmatprep.mubr.msk.bf16.mxu1 %vm277_vm1, %v273_v16 }
 0x13d   : > { %v274_v17 = vpop.trf.xlu1 }
 0x13e   : > { %610 = vmatmul.mubr.msk.bf16.vlgmr.msra.gmra.mrb[0].mxu1 %vm277_vm1, %v274_v17 }
 0x141   : > { %v275_v18 = vpop.trf.xlu1 }
 0x142   : > { %613 = vmatprep.mubr.msk.bf16.mxu1 %vm277_vm1, %v275_v18 }
 0x145   : > { %v276_v19 = vpop.trf.xlu1 }
 0x146   : > { %614 = vmatmul.mubr.msk.bf16.gmra.mrb[4].mxu1 %vm277_vm1, %v276_v19 }
 0x201   : > { %v603_v20 = vpop.f32.mrb[0].mxu0 }
 0x202   : > { %406 = vst.msk [vmem:[#allocation2 + $0x10] sm:$0xff] %vm403_vm2, %v603_v20  ;;  %v340_v21 = vpop.f32.mrb[1].mxu0 }
 0x203   : > { %404 = vst.msk [vmem:[#allocation2] sm:$0xff] %vm403_vm2, %v340_v21  ;;  %v604_v22 = vpop.f32.mrb[2].mxu0 }
 0x204   : > { %407 = vst.msk [vmem:[#allocation2 + $0x18] sm:$0xff] %vm403_vm2, %v604_v22  ;;  %v343_v23 = vpop.f32.mrb[3].mxu0 }
 0x205   : > { %405 = vst.msk [vmem:[#allocation2 + $0x8] sm:$0xff] %vm403_vm2, %v343_v23 }
 0x209   : > { %v607_v24 = vpop.f32.mrb[4].mxu0 }
 0x20a   : > { %410 = vst.msk [vmem:[#allocation2 + $0x30] sm:$0xff] %vm403_vm2, %v607_v24  ;;  %v356_v25 = vpop.f32.mrb[5].mxu0 }
 0x20b   : > { %v422_v26 = vld [vmem:[#allocation2 + $0x10] ss:$2 sm:$0xff]  ;;  %v438_v27 = vld [vmem:[#allocation2 + $0x11] ss:$2 sm:$0xff]  ;;  %408 = vst.msk [vmem:[#allocation2 + $0x20] sm:$0xff] %vm403_vm2, %v356_v25  ;;  %v608_v28 = vpop.f32.mrb[6].mxu0 }
 0x20c   : > { %v452_v29 = vadd.f32 %v438_v27, %v422_v26  ;;  %v420_v30 = vld [vmem:[#allocation2] ss:$2 sm:$0xff]  ;;  %v436_v31 = vld [vmem:[#allocation2 + $0x1] ss:$2 sm:$0xff]  ;;  %411 = vst.msk [vmem:[#allocation2 + $0x38] sm:$0xff] %vm403_vm2, %v608_v28  ;;  %v359_v32 = vpop.f32.mrb[7].mxu0 }
 0x20d   : > { %v451_v33 = vadd.f32 %v436_v31, %v420_v30  ;;  %409 = vst.msk [vmem:[#allocation2 + $0x28] sm:$0xff] %vm403_vm2, %v359_v32 }
 0x20f   : > { %v459_v34 = vadd.f32 %v452_v29, %v451_v33 }
 0x211   : > { %v463_v35 = vmul.f32 0.25, %v459_v34  ;;  %v611_v36 = vpop.f32.mrb[0].mxu1 }
 0x212   : > { %414 = vst.msk [vmem:[#allocation2 + $0x50] sm:$0xff] %vm403_vm2, %v611_v36  ;;  %v372_v37 = vpop.f32.mrb[1].mxu1 }
 0x213   : > { %467 = vst.msk [vmem:[%s971_s12] sm:$0xff] %vm403_vm2, %v463_v35  ;;  %v426_v38 = vld [vmem:[#allocation2 + $0x30] ss:$2 sm:$0xff]  ;;  %v442_v39 = vld [vmem:[#allocation2 + $0x31] ss:$2 sm:$0xff]  ;;  %412 = vst.msk [vmem:[#allocation2 + $0x40] sm:$0xff] %vm403_vm2, %v372_v37 }
 0x214   : > { %v612_v40 = vpop.f32.mrb[2].mxu1  ;;  %v454_v41 = vadd.f32 %v442_v39, %v426_v38  ;;  %v424_v42 = vld [vmem:[#allocation2 + $0x20] ss:$2 sm:$0xff]  ;;  %v440_v43 = vld [vmem:[#allocation2 + $0x21] ss:$2 sm:$0xff] }
 0x215   : > { %415 = vst.msk [vmem:[#allocation2 + $0x58] sm:$0xff] %vm403_vm2, %v612_v40  ;;  %v375_v44 = vpop.f32.mrb[3].mxu1  ;;  %v453_v45 = vadd.f32 %v440_v43, %v424_v42 }
 0x216   : > { %413 = vst.msk [vmem:[#allocation2 + $0x48] sm:$0xff] %vm403_vm2, %v375_v44 }
 0x217   : > { %v460_v46 = vadd.f32 %v454_v41, %v453_v45 }
 0x219   : > { %v464_v47 = vmul.f32 0.25, %v460_v46  ;;  %v615_v48 = vpop.f32.mrb[4].mxu1 }
 0x21a   : > { %418 = vst.msk [vmem:[#allocation2 + $0x70] sm:$0xff] %vm403_vm2, %v615_v48  ;;  %v388_v49 = vpop.f32.mrb[5].mxu1 }
 0x21b   : > { %468 = vst.msk [vmem:[%s971_s12 + $0x8] sm:$0xff] %vm403_vm2, %v464_v47  ;;  %416 = vst.msk [vmem:[#allocation2 + $0x60] sm:$0xff] %vm403_vm2, %v388_v49  ;;  %v616_v52 = vpop.f32.mrb[6].mxu1 }
 0x21c   : > { %v430_v50 = vld [vmem:[#allocation2 + $0x50] ss:$2 sm:$0xff]  ;;  %v446_v51 = vld [vmem:[#allocation2 + $0x51] ss:$2 sm:$0xff]  ;;  %419 = vst.msk [vmem:[#allocation2 + $0x78] sm:$0xff] %vm403_vm2, %v616_v52  ;;  %v391_v56 = vpop.f32.mrb[7].mxu1 }
 0x21d   : > { %v456_v53 = vadd.f32 %v446_v51, %v430_v50  ;;  %v428_v54 = vld [vmem:[#allocation2 + $0x40] ss:$2 sm:$0xff]  ;;  %v444_v55 = vld [vmem:[#allocation2 + $0x41] ss:$2 sm:$0xff]  ;;  %417 = vst.msk [vmem:[#allocation2 + $0x68] sm:$0xff] %vm403_vm2, %v391_v56 }
 0x21e   : > { %v455_v57 = vadd.f32 %v444_v55, %v428_v54 }
 0x220   : > { %v461_v58 = vadd.f32 %v456_v53, %v455_v57 }
 0x222   : > { %v465_v59 = vmul.f32 0.25, %v461_v58 }
 0x223   : > { %v434_v60 = vld [vmem:[#allocation2 + $0x70] ss:$2 sm:$0xff]  ;;  %v450_v61 = vld [vmem:[#allocation2 + $0x71] ss:$2 sm:$0xff] }
 0x224   : > { %469 = vst.msk [vmem:[%s971_s12 + $0x10] sm:$0xff] %vm403_vm2, %v465_v59  ;;  %v458_v62 = vadd.f32 %v450_v61, %v434_v60  ;;  %v432_v63 = vld [vmem:[#allocation2 + $0x60] ss:$2 sm:$0xff]  ;;  %v448_v0 = vld [vmem:[#allocation2 + $0x61] ss:$2 sm:$0xff] }
 0x225   : > { %v457_v1 = vadd.f32 %v448_v0, %v432_v63 }
 0x227   : > { %v462_v2 = vadd.f32 %v458_v62, %v457_v1 }
 0x229   : > { %v466_v3 = vmul.f32 0.25, %v462_v2 }
 0x22b   : > { %470 = vst.msk [vmem:[%s971_s12 + $0x18] sm:$0xff] %vm403_vm2, %v466_v3 }
 0x22c PF: > { %s17_s22 = sadd.s32 1, %s790_s22   ;;  %s1023_s15 = smov %s766_s16 }
 0x22d   : > { %p14_p11 = scmp.ge.s32.totalorder %s17_s22, 6   ;;  %s1024_s16 = smov %s770_s17 }
 0x22e   : > { %s1025_s17 = smov %s886_s9  ;;  %s1026_s18 = smov %s782_s20 }
 0x22f   : > { %s1027_s19 = smov %s786_s21  ;;  %s1028_s20 = smov %s1031_s24 }
 0x230   : > { %s1029_s21 = smov %s1035_s25  ;;  %16 = sbr.rel (!%p14_p11) target bundleno = 5 (0x5), region = 91 }
 0x237   :  { %501 = vsyncpa [#allocation4], 1 }
 0x238   :  { %503 = vsyncpa [#allocation4 + $0x1], 1 }

</bundles_post_ra>
